<compile_context>
chip_gen: v7x
topology: tpu7x:2x2x1
jax: 0.10.0
libtpu: 0.0.40
codegen_flags: <defaults>
</compile_context>

<pallas_src>
import functools
import numpy as np
import jax
import jax.numpy as jnp
from jax.experimental import pallas as pl
from jax.experimental.pallas import tpu as pltpu


def _round_up(x, m):
    return ((x + m - 1) // m) * m


def _cdiv(a, b):
    return (a + b - 1) // b


def _pick_tile(n):
    """Batch-row tile: >=2 tiles for mid-size batches (v7x megacore sharding),
    capped at 1024 rows (amortizes per-step overhead, fits default scoped VMEM
    on all of v5e/v6e/v7x)."""
    if n < 16:
        return _round_up(max(n, 1), 8)
    return min(1024, _round_up(_cdiv(n, 2), 8))


def fused_cnn_kernel(patches_ref, wc_ref, bc_ref, wd_ref, bd_ref, out_ref):
    # patches_ref: [HW, TILE, CK2P] bf16  im2col'd inputs, one lane-aligned
    #                                     128-wide slice per patch position
    # wc_ref:      [CK2P, OCP]      bf16  conv weight, (c,kh,kw) x oc
    # bc_ref:      [1, OCP]         f32   conv bias
    # wd_ref:      [HW, OCP, SP]    bf16  dense weight, per-hw slices
    # bd_ref:      [1, SP]          f32   dense bias
    # out_ref:     [TILE, SP]       f32
    hw_n = patches_ref.shape[0]
    tile = patches_ref.shape[1]
    sp = out_ref.shape[1]

    wc = wc_ref[...]
    bc = bc_ref[...]
    acc = jnp.zeros((tile, sp), jnp.float32)
    # HW is tiny (e.g. 3x3 = 9): fully unrolled; every matmul is a plain
    # lane-dense 2-D MXU op.  The Linear layer is the sum over patch positions.
    for hw in range(hw_n):
        conv = jnp.dot(patches_ref[hw], wc,
                       preferred_element_type=jnp.float32)          # [TILE, OCP] f32
        act = jnp.maximum(conv + bc, 0.0)                           # bias + ReLU (f32)
        # TODO(synk): Dropout(p=0.5) is identity in eval mode; a training-mode
        # mask would use pltpu.prng_seed / pltpu.stateful_bernoulli here.
        acc = acc + jnp.dot(act.astype(wd_ref.dtype), wd_ref[hw],
                            preferred_element_type=jnp.float32)     # [TILE, SP] f32
    out_ref[...] = acc + bd_ref[...]


def pack_params(wc, bc, wd, bd, *, input_channel, height, width,
                kernel_size=3, stride=3, param_dtype=jnp.bfloat16):
    """One-time parameter layout glue (call at load time, not per forward)."""
    assert stride == kernel_size, "non-overlapping-patch path requires stride == kernel"
    C, K = input_channel, kernel_size
    Hn = (height - K) // stride + 1
    Wn = (width - K) // stride + 1
    HW = Hn * Wn
    CK2 = C * K * K
    OC = wc.shape[0]
    S = wd.shape[0]

    CK2P = _round_up(CK2, 128)   # conv contraction dim, lane aligned
    OCP = _round_up(OC, 128)     # conv output channels, lane aligned
    SP = _round_up(S, 128)       # dense output width, lane aligned

    # Conv2d weight (OC, C, K, K) -> [CK2, OC] with (c, kh, kw) contraction order
    wc_mat = wc.reshape(OC, CK2).T
    wc_p = jnp.pad(wc_mat, ((0, CK2P - CK2), (0, OCP - OC))).astype(param_dtype)
    bc_p = jnp.pad(bc, (0, OCP - OC)).reshape(1, OCP).astype(jnp.float32)

    # PyTorch flattens the conv activation as (oc, h, w); slice the Linear
    # weight per patch position: wd_p[hw, oc, s]
    wd3 = wd.reshape(S, OC, HW).transpose(2, 1, 0)                  # [HW, OC, S]
    wd_p = jnp.pad(wd3, ((0, 0), (0, OCP - OC), (0, SP - S))).astype(param_dtype)
    bd_p = jnp.pad(bd, (0, SP - S)).reshape(1, SP).astype(jnp.float32)

    meta = dict(K=K, stride=stride, Hn=Hn, Wn=Wn, HW=HW, CK2=CK2, OC=OC, S=S,
                CK2P=CK2P, OCP=OCP, SP=SP)
    return (wc_p, bc_p, wd_p, bd_p), meta


def my_cnn_forward(x, packed, meta):
    """Forward pass of myCNN (eval mode). x: [N, C, H, W] float32."""
    wc_p, bc_p, wd_p, bd_p = packed
    N, C = x.shape[0], x.shape[1]
    K, stride = meta["K"], meta["stride"]
    Hn, Wn, HW, CK2 = meta["Hn"], meta["Wn"], meta["HW"], meta["CK2"]
    CK2P, SP, S = meta["CK2P"], meta["SP"], meta["S"]

    tile = _pick_tile(N)
    NP = _round_up(N, tile)

    # --- im2col straight into the padded (HW, NP, CK2P) kernel layout ---
    # early bf16 cast so the relayout moves half the bytes; a single jnp.pad
    # produces the final buffer (batch + lane padding fused under jit).
    xp = x[:, :, :Hn * stride, :Wn * stride].astype(wc_p.dtype)
    patches = (xp.reshape(N, C, Hn, K, Wn, K)
                 .transpose(2, 4, 0, 1, 3, 5)        # [Hn, Wn, N, C, K, K]
                 .reshape(HW, N, CK2))
    patches = jnp.pad(patches, ((0, 0), (0, NP - N), (0, CK2P - CK2)))

    out = pl.pallas_call(
        fused_cnn_kernel,
        out_shape=jax.ShapeDtypeStruct((NP, SP), jnp.float32),
        grid_spec=pltpu.PrefetchScalarGridSpec(
            num_scalar_prefetch=0,
            grid=(NP // tile,),
            in_specs=[
                pl.BlockSpec((HW, tile, CK2P), lambda i: (0, i, 0)),
                pl.BlockSpec((CK2P, meta["OCP"]), lambda i: (0, 0)),
                pl.BlockSpec((1, meta["OCP"]), lambda i: (0, 0)),
                pl.BlockSpec((HW, meta["OCP"], SP), lambda i: (0, 0, 0)),
                pl.BlockSpec((1, SP), lambda i: (0, 0)),
            ],
            out_specs=pl.BlockSpec((tile, SP), lambda i: (i, 0)),
        ),
        compiler_params=pltpu.CompilerParams(
            dimension_semantics=("parallel",)),
    )(patches, wc_p, bc_p, wd_p, bd_p)

    return out[:N, :S]


def ref_forward(x, wc, bc, wd, bd, *, stride=3):
    """Pure-JAX reference matching the PyTorch forward (eval mode)."""
    y = jax.lax.conv_general_dilated(
        x, wc, window_strides=(stride, stride), padding="VALID",
        dimension_numbers=("NCHW", "OIHW", "NCHW"))
    y = y + bc.reshape(1, -1, 1, 1)
    y = jnp.maximum(y, 0.0)
    y = y.reshape(y.shape[0], -1)
    return y @ wd.T + bd


if __name__ == "__main__":
    # Shapes consistent with myCNN(input_channel=4, output_feature_seq_length=8,
    # Height=9, Width=9, out_channel=48, kernel_size=3, stride=3)
    N, C, H, W = 2, 4, 9, 9
    K, STRIDE, OC, S = 3, 3, 48, 8
    Hn = (H - K) // STRIDE + 1
    Wn = (W - K) // STRIDE + 1

    key = jax.random.PRNGKey(0)
    kx, kwc, kbc, kwd, kbd = jax.random.split(key, 5)
    x = jax.random.normal(kx, (N, C, H, W), jnp.float32)
    wc = jax.random.normal(kwc, (OC, C, K, K), jnp.float32) * 0.1       # Conv2d weight
    bc = jax.random.normal(kbc, (OC,), jnp.float32) * 0.1               # Conv2d bias
    wd = jax.random.normal(kwd, (S, OC * Hn * Wn), jnp.float32) * 0.05  # Linear weight
    bd = jax.random.normal(kbd, (S,), jnp.float32) * 0.05               # Linear bias

    # one-time parameter packing (hoisted out of the per-call path)
    packed, meta = pack_params(wc, bc, wd, bd, input_channel=C,
                               height=H, width=W, kernel_size=K, stride=STRIDE)
    packed = jax.block_until_ready(packed)

    fwd = jax.jit(functools.partial(my_cnn_forward, packed=packed, meta=meta))

    # check 1: tiny batch (single grid step)
    out = jax.block_until_ready(fwd(x))
    ref = jax.block_until_ready(ref_forward(x, wc, bc, wd, bd, stride=STRIDE))
    # bf16 operands with f32 accumulation => bf16-appropriate tolerance
    np.testing.assert_allclose(np.asarray(out), np.asarray(ref), rtol=5e-2, atol=5e-2)

    # check 2: batch large enough to exercise padding and a multi-step grid
    # (>=2 tiles, so both v7x TensorCores would get work)
    N2 = 37
    x2 = jax.random.normal(jax.random.PRNGKey(1), (N2, C, H, W), jnp.float32)
    out2 = jax.block_until_ready(fwd(x2))
    ref2 = jax.block_until_ready(ref_forward(x2, wc, bc, wd, bd, stride=STRIDE))
    np.testing.assert_allclose(np.asarray(out2), np.asarray(ref2), rtol=5e-2, atol=5e-2)

    print("KERNEL_OK")
</pallas_src>

<mosaic_0001>
module attributes {stable_mosaic.version = 11 : i64} {
  func.func @fused_cnn_kernel(%arg0: i32, %arg1: memref<9x8x128xbf16, #tpu.memory_space<vmem>>, %arg2: memref<128x128xbf16, #tpu.memory_space<vmem>>, %arg3: memref<1x128xf32, #tpu.memory_space<vmem>>, %arg4: memref<9x128x128xbf16, #tpu.memory_space<vmem>>, %arg5: memref<1x128xf32, #tpu.memory_space<vmem>>, %arg6: memref<8x128xf32, #tpu.memory_space<vmem>>) attributes {dimension_semantics = [#tpu.dimension_semantics<parallel>], iteration_bounds = array<i64: 1>, scalar_prefetch = 0 : i64, scratch_operands = 0 : i64, tpu.core_type = #tpu.core_type<tc>, window_params = [{transform_indices = @transform_0, window_bounds = array<i64: 9, 8, 128>}, {pipeline_mode = #tpu.pipeline_mode<synchronous>, transform_indices = @transform_1, window_bounds = array<i64: 128, 128>}, {pipeline_mode = #tpu.pipeline_mode<synchronous>, transform_indices = @transform_2, window_bounds = array<i64: 1, 128>}, {pipeline_mode = #tpu.pipeline_mode<synchronous>, transform_indices = @transform_3, window_bounds = array<i64: 9, 128, 128>}, {pipeline_mode = #tpu.pipeline_mode<synchronous>, transform_indices = @transform_4, window_bounds = array<i64: 1, 128>}, {transform_indices = @transform_5, window_bounds = array<i64: 8, 128>}]} {
    %c0 = arith.constant 0 : index
    %c0_0 = arith.constant 0 : index
    %0 = vector.load %arg2[%c0, %c0_0] : memref<128x128xbf16, #tpu.memory_space<vmem>>, vector<128x128xbf16>
    %c0_1 = arith.constant 0 : index
    %c0_2 = arith.constant 0 : index
    %1 = vector.load %arg3[%c0_1, %c0_2] : memref<1x128xf32, #tpu.memory_space<vmem>>, vector<1x128xf32>
    %cst = arith.constant 0.000000e+00 : f32
    %2 = vector.broadcast %cst : f32 to vector<8x128xf32>
    %c0_3 = arith.constant 0 : index
    %c0_4 = arith.constant 0 : index
    %c0_5 = arith.constant 0 : index
    %3 = vector.load %arg1[%c0_3, %c0_4, %c0_5] : memref<9x8x128xbf16, #tpu.memory_space<vmem>>, vector<1x8x128xbf16>
    %4 = vector.shape_cast %3 : vector<1x8x128xbf16> to vector<8x128xbf16>
    %cst_6 = arith.constant dense<0.000000e+00> : vector<8x128xf32>
    %5 = tpu.matmul %4, %0, %cst_6 {dimension_numbers = #tpu.dot_dimension_numbers<[1], [0], [0], [1], [0, 0, 1, 1], [], []>} : vector<8x128xbf16>, vector<128x128xbf16>, vector<8x128xf32> -> vector<8x128xf32>
    %6 = vector.broadcast %1 : vector<1x128xf32> to vector<8x128xf32>
    %7 = arith.addf %5, %6 : vector<8x128xf32>
    %cst_7 = arith.constant 0.000000e+00 : f32
    %8 = vector.broadcast %cst_7 : f32 to vector<8x128xf32>
    %9 = arith.maximumf %7, %8 : vector<8x128xf32>
    %10 = arith.truncf %9 : vector<8x128xf32> to vector<8x128xbf16>
    %c0_8 = arith.constant 0 : index
    %c0_9 = arith.constant 0 : index
    %c0_10 = arith.constant 0 : index
    %11 = vector.load %arg4[%c0_8, %c0_9, %c0_10] : memref<9x128x128xbf16, #tpu.memory_space<vmem>>, vector<1x128x128xbf16>
    %12 = vector.shape_cast %11 : vector<1x128x128xbf16> to vector<128x128xbf16>
    %cst_11 = arith.constant dense<0.000000e+00> : vector<8x128xf32>
    %13 = tpu.matmul %10, %12, %cst_11 {dimension_numbers = #tpu.dot_dimension_numbers<[1], [0], [0], [1], [0, 0, 1, 1], [], []>} : vector<8x128xbf16>, vector<128x128xbf16>, vector<8x128xf32> -> vector<8x128xf32>
    %14 = arith.addf %2, %13 : vector<8x128xf32>
    %c1 = arith.constant 1 : index
    %c0_12 = arith.constant 0 : index
    %c0_13 = arith.constant 0 : index
    %15 = vector.load %arg1[%c1, %c0_12, %c0_13] : memref<9x8x128xbf16, #tpu.memory_space<vmem>>, vector<1x8x128xbf16>
    %16 = vector.shape_cast %15 : vector<1x8x128xbf16> to vector<8x128xbf16>
    %cst_14 = arith.constant dense<0.000000e+00> : vector<8x128xf32>
    %17 = tpu.matmul %16, %0, %cst_14 {dimension_numbers = #tpu.dot_dimension_numbers<[1], [0], [0], [1], [0, 0, 1, 1], [], []>} : vector<8x128xbf16>, vector<128x128xbf16>, vector<8x128xf32> -> vector<8x128xf32>
    %18 = vector.broadcast %1 : vector<1x128xf32> to vector<8x128xf32>
    %19 = arith.addf %17, %18 : vector<8x128xf32>
    %cst_15 = arith.constant 0.000000e+00 : f32
    %20 = vector.broadcast %cst_15 : f32 to vector<8x128xf32>
    %21 = arith.maximumf %19, %20 : vector<8x128xf32>
    %22 = arith.truncf %21 : vector<8x128xf32> to vector<8x128xbf16>
    %c1_16 = arith.constant 1 : index
    %c0_17 = arith.constant 0 : index
    %c0_18 = arith.constant 0 : index
    %23 = vector.load %arg4[%c1_16, %c0_17, %c0_18] : memref<9x128x128xbf16, #tpu.memory_space<vmem>>, vector<1x128x128xbf16>
    %24 = vector.shape_cast %23 : vector<1x128x128xbf16> to vector<128x128xbf16>
    %cst_19 = arith.constant dense<0.000000e+00> : vector<8x128xf32>
    %25 = tpu.matmul %22, %24, %cst_19 {dimension_numbers = #tpu.dot_dimension_numbers<[1], [0], [0], [1], [0, 0, 1, 1], [], []>} : vector<8x128xbf16>, vector<128x128xbf16>, vector<8x128xf32> -> vector<8x128xf32>
    %26 = arith.addf %14, %25 : vector<8x128xf32>
    %c2 = arith.constant 2 : index
    %c0_20 = arith.constant 0 : index
    %c0_21 = arith.constant 0 : index
    %27 = vector.load %arg1[%c2, %c0_20, %c0_21] : memref<9x8x128xbf16, #tpu.memory_space<vmem>>, vector<1x8x128xbf16>
    %28 = vector.shape_cast %27 : vector<1x8x128xbf16> to vector<8x128xbf16>
    %cst_22 = arith.constant dense<0.000000e+00> : vector<8x128xf32>
    %29 = tpu.matmul %28, %0, %cst_22 {dimension_numbers = #tpu.dot_dimension_numbers<[1], [0], [0], [1], [0, 0, 1, 1], [], []>} : vector<8x128xbf16>, vector<128x128xbf16>, vector<8x128xf32> -> vector<8x128xf32>
    %30 = vector.broadcast %1 : vector<1x128xf32> to vector<8x128xf32>
    %31 = arith.addf %29, %30 : vector<8x128xf32>
    %cst_23 = arith.constant 0.000000e+00 : f32
    %32 = vector.broadcast %cst_23 : f32 to vector<8x128xf32>
    %33 = arith.maximumf %31, %32 : vector<8x128xf32>
    %34 = arith.truncf %33 : vector<8x128xf32> to vector<8x128xbf16>
    %c2_24 = arith.constant 2 : index
    %c0_25 = arith.constant 0 : index
    %c0_26 = arith.constant 0 : index
    %35 = vector.load %arg4[%c2_24, %c0_25, %c0_26] : memref<9x128x128xbf16, #tpu.memory_space<vmem>>, vector<1x128x128xbf16>
    %36 = vector.shape_cast %35 : vector<1x128x128xbf16> to vector<128x128xbf16>
    %cst_27 = arith.constant dense<0.000000e+00> : vector<8x128xf32>
    %37 = tpu.matmul %34, %36, %cst_27 {dimension_numbers = #tpu.dot_dimension_numbers<[1], [0], [0], [1], [0, 0, 1, 1], [], []>} : vector<8x128xbf16>, vector<128x128xbf16>, vector<8x128xf32> -> vector<8x128xf32>
    %38 = arith.addf %26, %37 : vector<8x128xf32>
    %c3 = arith.constant 3 : index
    %c0_28 = arith.constant 0 : index
    %c0_29 = arith.constant 0 : index
    %39 = vector.load %arg1[%c3, %c0_28, %c0_29] : memref<9x8x128xbf16, #tpu.memory_space<vmem>>, vector<1x8x128xbf16>
    %40 = vector.shape_cast %39 : vector<1x8x128xbf16> to vector<8x128xbf16>
    %cst_30 = arith.constant dense<0.000000e+00> : vector<8x128xf32>
    %41 = tpu.matmul %40, %0, %cst_30 {dimension_numbers = #tpu.dot_dimension_numbers<[1], [0], [0], [1], [0, 0, 1, 1], [], []>} : vector<8x128xbf16>, vector<128x128xbf16>, vector<8x128xf32> -> vector<8x128xf32>
    %42 = vector.broadcast %1 : vector<1x128xf32> to vector<8x128xf32>
    %43 = arith.addf %41, %42 : vector<8x128xf32>
    %cst_31 = arith.constant 0.000000e+00 : f32
    %44 = vector.broadcast %cst_31 : f32 to vector<8x128xf32>
    %45 = arith.maximumf %43, %44 : vector<8x128xf32>
    %46 = arith.truncf %45 : vector<8x128xf32> to vector<8x128xbf16>
    %c3_32 = arith.constant 3 : index
    %c0_33 = arith.constant 0 : index
    %c0_34 = arith.constant 0 : index
    %47 = vector.load %arg4[%c3_32, %c0_33, %c0_34] : memref<9x128x128xbf16, #tpu.memory_space<vmem>>, vector<1x128x128xbf16>
    %48 = vector.shape_cast %47 : vector<1x128x128xbf16> to vector<128x128xbf16>
    %cst_35 = arith.constant dense<0.000000e+00> : vector<8x128xf32>
    %49 = tpu.matmul %46, %48, %cst_35 {dimension_numbers = #tpu.dot_dimension_numbers<[1], [0], [0], [1], [0, 0, 1, 1], [], []>} : vector<8x128xbf16>, vector<128x128xbf16>, vector<8x128xf32> -> vector<8x128xf32>
    %50 = arith.addf %38, %49 : vector<8x128xf32>
    %c4 = arith.constant 4 : index
    %c0_36 = arith.constant 0 : index
    %c0_37 = arith.constant 0 : index
    %51 = vector.load %arg1[%c4, %c0_36, %c0_37] : memref<9x8x128xbf16, #tpu.memory_space<vmem>>, vector<1x8x128xbf16>
    %52 = vector.shape_cast %51 : vector<1x8x128xbf16> to vector<8x128xbf16>
    %cst_38 = arith.constant dense<0.000000e+00> : vector<8x128xf32>
    %53 = tpu.matmul %52, %0, %cst_38 {dimension_numbers = #tpu.dot_dimension_numbers<[1], [0], [0], [1], [0, 0, 1, 1], [], []>} : vector<8x128xbf16>, vector<128x128xbf16>, vector<8x128xf32> -> vector<8x128xf32>
    %54 = vector.broadcast %1 : vector<1x128xf32> to vector<8x128xf32>
    %55 = arith.addf %53, %54 : vector<8x128xf32>
    %cst_39 = arith.constant 0.000000e+00 : f32
    %56 = vector.broadcast %cst_39 : f32 to vector<8x128xf32>
    %57 = arith.maximumf %55, %56 : vector<8x128xf32>
    %58 = arith.truncf %57 : vector<8x128xf32> to vector<8x128xbf16>
    %c4_40 = arith.constant 4 : index
    %c0_41 = arith.constant 0 : index
    %c0_42 = arith.constant 0 : index
    %59 = vector.load %arg4[%c4_40, %c0_41, %c0_42] : memref<9x128x128xbf16, #tpu.memory_space<vmem>>, vector<1x128x128xbf16>
    %60 = vector.shape_cast %59 : vector<1x128x128xbf16> to vector<128x128xbf16>
    %cst_43 = arith.constant dense<0.000000e+00> : vector<8x128xf32>
    %61 = tpu.matmul %58, %60, %cst_43 {dimension_numbers = #tpu.dot_dimension_numbers<[1], [0], [0], [1], [0, 0, 1, 1], [], []>} : vector<8x128xbf16>, vector<128x128xbf16>, vector<8x128xf32> -> vector<8x128xf32>
    %62 = arith.addf %50, %61 : vector<8x128xf32>
    %c5 = arith.constant 5 : index
    %c0_44 = arith.constant 0 : index
    %c0_45 = arith.constant 0 : index
    %63 = vector.load %arg1[%c5, %c0_44, %c0_45] : memref<9x8x128xbf16, #tpu.memory_space<vmem>>, vector<1x8x128xbf16>
    %64 = vector.shape_cast %63 : vector<1x8x128xbf16> to vector<8x128xbf16>
    %cst_46 = arith.constant dense<0.000000e+00> : vector<8x128xf32>
    %65 = tpu.matmul %64, %0, %cst_46 {dimension_numbers = #tpu.dot_dimension_numbers<[1], [0], [0], [1], [0, 0, 1, 1], [], []>} : vector<8x128xbf16>, vector<128x128xbf16>, vector<8x128xf32> -> vector<8x128xf32>
    %66 = vector.broadcast %1 : vector<1x128xf32> to vector<8x128xf32>
    %67 = arith.addf %65, %66 : vector<8x128xf32>
    %cst_47 = arith.constant 0.000000e+00 : f32
    %68 = vector.broadcast %cst_47 : f32 to vector<8x128xf32>
    %69 = arith.maximumf %67, %68 : vector<8x128xf32>
    %70 = arith.truncf %69 : vector<8x128xf32> to vector<8x128xbf16>
    %c5_48 = arith.constant 5 : index
    %c0_49 = arith.constant 0 : index
    %c0_50 = arith.constant 0 : index
    %71 = vector.load %arg4[%c5_48, %c0_49, %c0_50] : memref<9x128x128xbf16, #tpu.memory_space<vmem>>, vector<1x128x128xbf16>
    %72 = vector.shape_cast %71 : vector<1x128x128xbf16> to vector<128x128xbf16>
    %cst_51 = arith.constant dense<0.000000e+00> : vector<8x128xf32>
    %73 = tpu.matmul %70, %72, %cst_51 {dimension_numbers = #tpu.dot_dimension_numbers<[1], [0], [0], [1], [0, 0, 1, 1], [], []>} : vector<8x128xbf16>, vector<128x128xbf16>, vector<8x128xf32> -> vector<8x128xf32>
    %74 = arith.addf %62, %73 : vector<8x128xf32>
    %c6 = arith.constant 6 : index
    %c0_52 = arith.constant 0 : index
    %c0_53 = arith.constant 0 : index
    %75 = vector.load %arg1[%c6, %c0_52, %c0_53] : memref<9x8x128xbf16, #tpu.memory_space<vmem>>, vector<1x8x128xbf16>
    %76 = vector.shape_cast %75 : vector<1x8x128xbf16> to vector<8x128xbf16>
    %cst_54 = arith.constant dense<0.000000e+00> : vector<8x128xf32>
    %77 = tpu.matmul %76, %0, %cst_54 {dimension_numbers = #tpu.dot_dimension_numbers<[1], [0], [0], [1], [0, 0, 1, 1], [], []>} : vector<8x128xbf16>, vector<128x128xbf16>, vector<8x128xf32> -> vector<8x128xf32>
    %78 = vector.broadcast %1 : vector<1x128xf32> to vector<8x128xf32>
    %79 = arith.addf %77, %78 : vector<8x128xf32>
    %cst_55 = arith.constant 0.000000e+00 : f32
    %80 = vector.broadcast %cst_55 : f32 to vector<8x128xf32>
    %81 = arith.maximumf %79, %80 : vector<8x128xf32>
    %82 = arith.truncf %81 : vector<8x128xf32> to vector<8x128xbf16>
    %c6_56 = arith.constant 6 : index
    %c0_57 = arith.constant 0 : index
    %c0_58 = arith.constant 0 : index
    %83 = vector.load %arg4[%c6_56, %c0_57, %c0_58] : memref<9x128x128xbf16, #tpu.memory_space<vmem>>, vector<1x128x128xbf16>
    %84 = vector.shape_cast %83 : vector<1x128x128xbf16> to vector<128x128xbf16>
    %cst_59 = arith.constant dense<0.000000e+00> : vector<8x128xf32>
    %85 = tpu.matmul %82, %84, %cst_59 {dimension_numbers = #tpu.dot_dimension_numbers<[1], [0], [0], [1], [0, 0, 1, 1], [], []>} : vector<8x128xbf16>, vector<128x128xbf16>, vector<8x128xf32> -> vector<8x128xf32>
    %86 = arith.addf %74, %85 : vector<8x128xf32>
    %c7 = arith.constant 7 : index
    %c0_60 = arith.constant 0 : index
    %c0_61 = arith.constant 0 : index
    %87 = vector.load %arg1[%c7, %c0_60, %c0_61] : memref<9x8x128xbf16, #tpu.memory_space<vmem>>, vector<1x8x128xbf16>
    %88 = vector.shape_cast %87 : vector<1x8x128xbf16> to vector<8x128xbf16>
    %cst_62 = arith.constant dense<0.000000e+00> : vector<8x128xf32>
    %89 = tpu.matmul %88, %0, %cst_62 {dimension_numbers = #tpu.dot_dimension_numbers<[1], [0], [0], [1], [0, 0, 1, 1], [], []>} : vector<8x128xbf16>, vector<128x128xbf16>, vector<8x128xf32> -> vector<8x128xf32>
    %90 = vector.broadcast %1 : vector<1x128xf32> to vector<8x128xf32>
    %91 = arith.addf %89, %90 : vector<8x128xf32>
    %cst_63 = arith.constant 0.000000e+00 : f32
    %92 = vector.broadcast %cst_63 : f32 to vector<8x128xf32>
    %93 = arith.maximumf %91, %92 : vector<8x128xf32>
    %94 = arith.truncf %93 : vector<8x128xf32> to vector<8x128xbf16>
    %c7_64 = arith.constant 7 : index
    %c0_65 = arith.constant 0 : index
    %c0_66 = arith.constant 0 : index
    %95 = vector.load %arg4[%c7_64, %c0_65, %c0_66] : memref<9x128x128xbf16, #tpu.memory_space<vmem>>, vector<1x128x128xbf16>
    %96 = vector.shape_cast %95 : vector<1x128x128xbf16> to vector<128x128xbf16>
    %cst_67 = arith.constant dense<0.000000e+00> : vector<8x128xf32>
    %97 = tpu.matmul %94, %96, %cst_67 {dimension_numbers = #tpu.dot_dimension_numbers<[1], [0], [0], [1], [0, 0, 1, 1], [], []>} : vector<8x128xbf16>, vector<128x128xbf16>, vector<8x128xf32> -> vector<8x128xf32>
    %98 = arith.addf %86, %97 : vector<8x128xf32>
    %c8 = arith.constant 8 : index
    %c0_68 = arith.constant 0 : index
    %c0_69 = arith.constant 0 : index
    %99 = vector.load %arg1[%c8, %c0_68, %c0_69] : memref<9x8x128xbf16, #tpu.memory_space<vmem>>, vector<1x8x128xbf16>
    %100 = vector.shape_cast %99 : vector<1x8x128xbf16> to vector<8x128xbf16>
    %cst_70 = arith.constant dense<0.000000e+00> : vector<8x128xf32>
    %101 = tpu.matmul %100, %0, %cst_70 {dimension_numbers = #tpu.dot_dimension_numbers<[1], [0], [0], [1], [0, 0, 1, 1], [], []>} : vector<8x128xbf16>, vector<128x128xbf16>, vector<8x128xf32> -> vector<8x128xf32>
    %102 = vector.broadcast %1 : vector<1x128xf32> to vector<8x128xf32>
    %103 = arith.addf %101, %102 : vector<8x128xf32>
    %cst_71 = arith.constant 0.000000e+00 : f32
    %104 = vector.broadcast %cst_71 : f32 to vector<8x128xf32>
    %105 = arith.maximumf %103, %104 : vector<8x128xf32>
    %106 = arith.truncf %105 : vector<8x128xf32> to vector<8x128xbf16>
    %c8_72 = arith.constant 8 : index
    %c0_73 = arith.constant 0 : index
    %c0_74 = arith.constant 0 : index
    %107 = vector.load %arg4[%c8_72, %c0_73, %c0_74] : memref<9x128x128xbf16, #tpu.memory_space<vmem>>, vector<1x128x128xbf16>
    %108 = vector.shape_cast %107 : vector<1x128x128xbf16> to vector<128x128xbf16>
    %cst_75 = arith.constant dense<0.000000e+00> : vector<8x128xf32>
    %109 = tpu.matmul %106, %108, %cst_75 {dimension_numbers = #tpu.dot_dimension_numbers<[1], [0], [0], [1], [0, 0, 1, 1], [], []>} : vector<8x128xbf16>, vector<128x128xbf16>, vector<8x128xf32> -> vector<8x128xf32>
    %110 = arith.addf %98, %109 : vector<8x128xf32>
    %c0_76 = arith.constant 0 : index
    %c0_77 = arith.constant 0 : index
    %111 = vector.load %arg5[%c0_76, %c0_77] : memref<1x128xf32, #tpu.memory_space<vmem>>, vector<1x128xf32>
    %112 = vector.broadcast %111 : vector<1x128xf32> to vector<8x128xf32>
    %113 = arith.addf %110, %112 : vector<8x128xf32>
    %c0_78 = arith.constant 0 : index
    %c0_79 = arith.constant 0 : index
    %114 = vector.load %arg6[%c0_78, %c0_79] : memref<8x128xf32, #tpu.memory_space<vmem>>, vector<8x128xf32>
    tpu.vector_store %arg6[%c0_78, %c0_79], %113 {strides = array<i32>} : memref<8x128xf32, #tpu.memory_space<vmem>>, vector<8x128xf32>,
    return
  }
  func.func @transform_0(%arg0: i32) -> (i32, i32, i32) {
    %c0_i32 = arith.constant 0 : i32
    %c0_i32_0 = arith.constant 0 : i32
    %c0_i32_1 = arith.constant 0 : i32
    return %c0_i32, %arg0, %c0_i32_0 : i32, i32, i32
  }
  func.func @transform_1(%arg0: i32) -> (i32, i32) {
    %c0_i32 = arith.constant 0 : i32
    %c0_i32_0 = arith.constant 0 : i32
    %c0_i32_1 = arith.constant 0 : i32
    return %c0_i32, %c0_i32_0 : i32, i32
  }
  func.func @transform_2(%arg0: i32) -> (i32, i32) {
    %c0_i32 = arith.constant 0 : i32
    %c0_i32_0 = arith.constant 0 : i32
    %c0_i32_1 = arith.constant 0 : i32
    return %c0_i32, %c0_i32_0 : i32, i32
  }
  func.func @transform_3(%arg0: i32) -> (i32, i32, i32) {
    %c0_i32 = arith.constant 0 : i32
    %c0_i32_0 = arith.constant 0 : i32
    %c0_i32_1 = arith.constant 0 : i32
    %c0_i32_2 = arith.constant 0 : i32
    return %c0_i32, %c0_i32_0, %c0_i32_1 : i32, i32, i32
  }
  func.func @transform_4(%arg0: i32) -> (i32, i32) {
    %c0_i32 = arith.constant 0 : i32
    %c0_i32_0 = arith.constant 0 : i32
    %c0_i32_1 = arith.constant 0 : i32
    return %c0_i32, %c0_i32_0 : i32, i32
  }
  func.func @transform_5(%arg0: i32) -> (i32, i32) {
    %c0_i32 = arith.constant 0 : i32
    %c0_i32_0 = arith.constant 0 : i32
    return %arg0, %c0_i32 : i32, i32
  }
}

</mosaic_0001>

<bundles_post_ra>
// kernel: my_cnn_forward.1
= control target key start
LH: loop header
LB: loop body
LE: loop exit
PB: predicated region body
PF: predicated region fallthrough
CT: control target
= control target key end

     0   :  { %v2273_v0 = vmov 0.0   ;;  %vm2274_vm0 = vmmov 0   ;;  %s2863_s1 = inlined_call_operand.vmem [shape: bf16[128,128], index: 1, kind: input, shape index: {}]   ;;  %s2864_s3 = inlined_call_operand.vmem [shape: bf16[9,128,128], index: 3, kind: input, shape index: {}]   ;;  %s2865_s0 = inlined_call_operand.vmem [shape: bf16[9,8,128], index: 0, kind: input, shape index: {}]   ;;  %s2866_s2 = inlined_call_operand.vmem [shape: f32[1,128], index: 2, kind: input, shape index: {}]   ;;  %s2867_s4 = inlined_call_operand.vmem [shape: f32[1,128], index: 4, kind: input, shape index: {}]   ;;  %s2868_s5 = inlined_call_operand.vmem [shape: f32[8,128], index: 5, kind: output, shape index: {}]  }
   0x1   :  { %1831 = vmatprep.subr.bf16.mxu0 %v2273_v0  ;;  %1851 = vmatprep.subr.bf16.mxu1 %v2273_v0  ;;  %v2310_v1 = vld [vmem:[%s2863_s1] sm:$0xff]   ;;  %v2321_v2 = vld [vmem:[%s2863_s1 + $0x8] sm:$0xff]   ;;  %v2330_v3 = vld [vmem:[%s2863_s1 + $0x10] sm:$0xff]  }
   0x2   :  { %1847 = vmatprep.mubr.msk.bf16.mxu0 %vm2274_vm0, %v2273_v0  ;;  %1867 = vmatprep.mubr.msk.bf16.mxu1 %vm2274_vm0, %v2273_v0  ;;  %v2339_v4 = vld [vmem:[%s2863_s1 + $0x18] sm:$0xff]   ;;  %v2348_v5 = vld [vmem:[%s2863_s1 + $0x20] sm:$0xff]   ;;  %v2357_v6 = vld [vmem:[%s2863_s1 + $0x28] sm:$0xff]  }
   0x3   :  { %1832 = vmatpush3.bf16.msra.mxu0 %v2310_v1  ;;  %1852 = vmatpush3.bf16.msra.mxu1 %v2310_v1  ;;  %v2364_v7 = vld [vmem:[%s2863_s1 + $0x30] sm:$0xff]   ;;  %v2373_v8 = vld [vmem:[%s2863_s1 + $0x38] sm:$0xff]   ;;  %v38_v9 = vld [vmem:[%s2865_s0] sm:$0xf] }
   0x4   :  { %1833 = vmatprep.subr.bf16.mxu0 %v2273_v0  ;;  %1853 = vmatprep.subr.bf16.mxu1 %v2273_v0  ;;  %v1460_v10 = vld [vmem:[%s2865_s0 + $0x4] sm:$0xf]  ;;  %v2203_v13 = vld [vmem:[%s2864_s3 + $0x48] sm:$0xff]   ;;  %v2205_v15 = vld [vmem:[%s2864_s3 + $0x50] sm:$0xff]  }
   0x5   :  { %v2201_v11 = vld [vmem:[%s2864_s3 + $0x40] sm:$0xff]   ;;  %v2204_v14 = vld [vmem:[%s2864_s3 + $0x8] sm:$0xff]   ;;  %v2206_v16 = vld [vmem:[%s2864_s3 + $0x10] sm:$0xff]  }
   0x6   :  { %v2202_v12 = vld [vmem:[%s2864_s3] sm:$0xff]   ;;  %v2207_v17 = vld [vmem:[%s2864_s3 + $0x58] sm:$0xff]   ;;  %v2211_v21 = vld [vmem:[%s2864_s3 + $0x68] sm:$0xff]  }
   0x7   :  { %1834 = vmatpush3.bf16.msra.mxu0 %v2321_v2  ;;  %1854 = vmatpush3.bf16.msra.mxu1 %v2321_v2  ;;  %v2208_v18 = vld [vmem:[%s2864_s3 + $0x18] sm:$0xff]   ;;  %v2209_v19 = vld [vmem:[%s2864_s3 + $0x60] sm:$0xff]   ;;  %v2212_v22 = vld [vmem:[%s2864_s3 + $0x28] sm:$0xff]  }
   0x8   :  { %1835 = vmatprep.subr.bf16.mxu0 %v2273_v0  ;;  %1855 = vmatprep.subr.bf16.mxu1 %v2273_v0  ;;  %v2210_v20 = vld [vmem:[%s2864_s3 + $0x20] sm:$0xff]   ;;  %v2213_v23 = vld [vmem:[%s2864_s3 + $0x70] sm:$0xff]   ;;  %v2215_v25 = vld [vmem:[%s2864_s3 + $0x78] sm:$0xff]  }
   0x9   :  { %v2214_v24 = vld [vmem:[%s2864_s3 + $0x30] sm:$0xff]   ;;  %v2216_v26 = vld [vmem:[%s2864_s3 + $0x38] sm:$0xff]   ;;  %v2460_v27 = vld [vmem:[%s2866_s2] ss:$0 sm:$0xff] }
   0xa   :  { %v1493_v42 = vld [vmem:[%s2865_s0 + $0x8] sm:$0xf]  ;;  %v1518_v43 = vld [vmem:[%s2865_s0 + $0xc] sm:$0xf]  ;;  %v2217_v44 = vld [vmem:[%s2864_s3 + $0x80] sm:$0xff]  }
   0xb   :  { %1836 = vmatpush3.bf16.msra.mxu0 %v2330_v3  ;;  %1856 = vmatpush3.bf16.msra.mxu1 %v2330_v3  ;;  %v1543_v45 = vld [vmem:[%s2865_s0 + $0x10] sm:$0xf]  ;;  %v2218_v46 = vld [vmem:[%s2864_s3 + $0x88] sm:$0xff]   ;;  %v2220_v48 = vld [vmem:[%s2864_s3 + $0x98] sm:$0xff]  }
   0xc   :  { %1837 = vmatprep.subr.bf16.mxu0 %v2273_v0  ;;  %1857 = vmatprep.subr.bf16.mxu1 %v2273_v0  ;;  %v2219_v47 = vld [vmem:[%s2864_s3 + $0x90] sm:$0xff]   ;;  %v2221_v49 = vld [vmem:[%s2864_s3 + $0xa0] sm:$0xff]   ;;  %v2222_v50 = vld [vmem:[%s2864_s3 + $0xa8] sm:$0xff]  }
   0xd   :  { %v2223_v51 = vld [vmem:[%s2864_s3 + $0xb0] sm:$0xff]   ;;  %v2224_v52 = vld [vmem:[%s2864_s3 + $0xb8] sm:$0xff]  }
   0xe   :  { %v1568_v53 = vld [vmem:[%s2865_s0 + $0x14] sm:$0xf]  ;;  %v1593_v54 = vld [vmem:[%s2865_s0 + $0x18] sm:$0xf]  ;;  %v1618_v55 = vld [vmem:[%s2865_s0 + $0x1c] sm:$0xf] }
   0xf   :  { %1838 = vmatpush3.bf16.msra.mxu0 %v2339_v4  ;;  %1858 = vmatpush3.bf16.msra.mxu1 %v2339_v4 }
  0x10   :  { %1839 = vmatprep.subr.bf16.mxu0 %v2273_v0  ;;  %1859 = vmatprep.subr.bf16.mxu1 %v2273_v0 }
  0x13   :  { %1840 = vmatpush3.bf16.msra.mxu0 %v2348_v5  ;;  %1860 = vmatpush3.bf16.msra.mxu1 %v2348_v5 }
  0x14   :  { %1841 = vmatprep.subr.bf16.mxu0 %v2273_v0  ;;  %1861 = vmatprep.subr.bf16.mxu1 %v2273_v0 }
  0x17   :  { %1842 = vmatpush3.bf16.msra.mxu0 %v2357_v6  ;;  %1862 = vmatpush3.bf16.msra.mxu1 %v2357_v6 }
  0x18   :  { %1843 = vmatprep.subr.bf16.mxu0 %v2273_v0  ;;  %1863 = vmatprep.subr.bf16.mxu1 %v2273_v0 }
  0x1b   :  { %1844 = vmatpush3.bf16.msra.mxu0 %v2364_v7  ;;  %1864 = vmatpush3.bf16.msra.mxu1 %v2364_v7 }
  0x1c   :  { %1845 = vmatprep.subr.bf16.mxu0 %v2273_v0  ;;  %1865 = vmatprep.subr.bf16.mxu1 %v2273_v0 }
  0x1f   :  { %1846 = vmatpush3.bf16.msra.mxu0 %v2373_v8  ;;  %1866 = vmatpush3.bf16.msra.mxu1 %v2373_v8 }
  0x20   :  { %1871 = vmatprep.subr.bf16.mxu0 %v2273_v0  ;;  %1891 = vmatprep.subr.bf16.mxu1 %v2273_v0 }
  0x22   :  { %1848 = vmatmul.mubr.bf16.vlgmr.msra.gmra.mrb[0].mxu0 %v38_v9  ;;  %1868 = vmatmul.mubr.bf16.vlgmr.msra.gmra.mrb[0].mxu1 %v1460_v10 }
  0x23   :  { %1872 = vmatpush3.bf16.msra.mxu0 %v2201_v11  ;;  %1892 = vmatpush3.bf16.msra.mxu1 %v2202_v12  ;;  %v2227_v12 = vld [vmem:[%s2864_s3 + $0xd0] sm:$0xff]  }
  0x24   :  { %1873 = vmatprep.subr.bf16.mxu0 %v2273_v0  ;;  %1893 = vmatprep.subr.bf16.mxu1 %v2273_v0 }
  0x25   :  { %1887 = vmatprep.mubr.msk.bf16.mxu0 %vm2274_vm0, %v2273_v0  ;;  %1907 = vmatprep.mubr.msk.bf16.mxu1 %vm2274_vm0, %v2273_v0 }
  0x27   :  { %1874 = vmatpush3.bf16.msra.mxu0 %v2203_v13  ;;  %1894 = vmatpush3.bf16.msra.mxu1 %v2204_v14  ;;  %v2228_v13 = vld [vmem:[%s2864_s3 + $0xd8] sm:$0xff]   ;;  %v2229_v14 = vld [vmem:[%s2864_s3 + $0xe0] sm:$0xff]  }
  0x28   :  { %1875 = vmatprep.subr.bf16.mxu0 %v2273_v0  ;;  %1895 = vmatprep.subr.bf16.mxu1 %v2273_v0 }
  0x2b   :  { %1876 = vmatpush3.bf16.msra.mxu0 %v2205_v15  ;;  %1896 = vmatpush3.bf16.msra.mxu1 %v2206_v16  ;;  %v2230_v15 = vld [vmem:[%s2864_s3 + $0xe8] sm:$0xff]   ;;  %v2231_v16 = vld [vmem:[%s2864_s3 + $0xf0] sm:$0xff]  }
  0x2c   :  { %1877 = vmatprep.subr.bf16.mxu0 %v2273_v0  ;;  %1897 = vmatprep.subr.bf16.mxu1 %v2273_v0 }
  0x2f   :  { %1878 = vmatpush3.bf16.msra.mxu0 %v2207_v17  ;;  %1898 = vmatpush3.bf16.msra.mxu1 %v2208_v18  ;;  %v2232_v18 = vld [vmem:[%s2864_s3 + $0xf8] sm:$0xff]  }
  0x30   :  { %1879 = vmatprep.subr.bf16.mxu0 %v2273_v0  ;;  %1899 = vmatprep.subr.bf16.mxu1 %v2273_v0 }
  0x33   :  { %1880 = vmatpush3.bf16.msra.mxu0 %v2209_v19  ;;  %1900 = vmatpush3.bf16.msra.mxu1 %v2210_v20 }
  0x34   :  { %1881 = vmatprep.subr.bf16.mxu0 %v2273_v0  ;;  %1901 = vmatprep.subr.bf16.mxu1 %v2273_v0 }
  0x37   :  { %1882 = vmatpush3.bf16.msra.mxu0 %v2211_v21  ;;  %1902 = vmatpush3.bf16.msra.mxu1 %v2212_v22 }
  0x38   :  { %1883 = vmatprep.subr.bf16.mxu0 %v2273_v0  ;;  %1903 = vmatprep.subr.bf16.mxu1 %v2273_v0 }
  0x3b   :  { %1884 = vmatpush3.bf16.msra.mxu0 %v2213_v23  ;;  %1904 = vmatpush3.bf16.msra.mxu1 %v2214_v24  ;;  %v2233_v24 = vld [vmem:[%s2864_s3 + $0x100] sm:$0xff]  }
  0x3c   :  { %1885 = vmatprep.subr.bf16.mxu0 %v2273_v0  ;;  %1905 = vmatprep.subr.bf16.mxu1 %v2273_v0 }
  0x3f   :  { %1886 = vmatpush3.bf16.msra.mxu0 %v2215_v25  ;;  %1906 = vmatpush3.bf16.msra.mxu1 %v2216_v26  ;;  %v2234_v26 = vld [vmem:[%s2864_s3 + $0x108] sm:$0xff]  }
  0x40   :  { %1911 = vmatprep.subr.bf16.mxu0 %v2273_v0  ;;  %1931 = vmatprep.subr.bf16.mxu1 %v2273_v0 }
  0xf5   :  { %v127_v28 = vpop.f32.mrb[0].mxu0  ;;  %v187_v29 = vpop.f32.mrb[0].mxu1 }
  0xf6   :  { %v128_v30 = vadd.f32 %v2460_v27, %v127_v28  ;;  %v188_v31 = vadd.f32 %v2460_v27, %v187_v29  ;;  %v1869_v32 = vpop.f32.mrb[1].mxu1  ;;  %v1849_v33 = vpop.f32.mrb[1].mxu0  ;;  %v2235_v28 = vld [vmem:[%s2864_s3 + $0x110] sm:$0xff]   ;;  %v2236_v29 = vld [vmem:[%s2864_s3 + $0x118] sm:$0xff]  }
  0xf7   :  { %v190_v34 = vpop.f32.mrb[2].mxu1  ;;  %v130_v35 = vpop.f32.mrb[2].mxu0  ;;  %v2239_v32 = vld [vmem:[%s2864_s3 + $0x130] sm:$0xff]  }
  0xf8   :  { %v133_v36 = vmax.f32 %v128_v30, 0.0  ;;  %v193_v37 = vmax.f32 %v188_v31, 0.0  ;;  %v1870_v38 = vpop.f32.mrb[3].mxu1  ;;  %v1850_v39 = vpop.f32.mrb[3].mxu0  ;;  %v2237_v30 = vld [vmem:[%s2864_s3 + $0x120] sm:$0xff]   ;;  %v2238_v31 = vld [vmem:[%s2864_s3 + $0x128] sm:$0xff]  }
  0xf9   :  { %v2240_v34 = vld [vmem:[%s2864_s3 + $0x138] sm:$0xff]  }
  0xfa   :  { %v134_v40 = vpack.c.bf16 %v133_v36, %v133_v36  ;;  %v194_v41 = vpack.c.bf16 %v193_v37, %v193_v37 }
  0xfc   :  { %1888 = vmatmul.mubr.bf16.vlgmr.msra.gmra.mrb[4].mxu0 %v194_v41  ;;  %1908 = vmatmul.mubr.bf16.vlgmr.msra.gmra.mrb[4].mxu1 %v134_v40  ;;  %v2241_v40 = vld [vmem:[%s2864_s3 + $0x140] sm:$0xff]  }
  0xfd   :  { %1912 = vmatpush3.bf16.msra.mxu0 %v2310_v1  ;;  %1927 = vmatprep.mubr.msk.bf16.mxu0 %vm2274_vm0, %v2273_v0 }
  0xfe   :  { %1913 = vmatprep.subr.bf16.mxu0 %v2273_v0  ;;  %1947 = vmatprep.mubr.msk.bf16.mxu1 %vm2274_vm0, %v2273_v0 }
  0xff   :  { %1932 = vmatpush3.bf16.msra.mxu1 %v2217_v44  ;;  %v2244_v44 = vld [vmem:[%s2864_s3 + $0x158] sm:$0xff]  }
 0x100   :  { %1933 = vmatprep.subr.bf16.mxu1 %v2273_v0 }
 0x101   :  { %1914 = vmatpush3.bf16.msra.mxu0 %v2321_v2 }
 0x102   :  { %1915 = vmatprep.subr.bf16.mxu0 %v2273_v0 }
 0x103   :  { %1934 = vmatpush3.bf16.msra.mxu1 %v2218_v46  ;;  %v2246_v46 = vld [vmem:[%s2864_s3 + $0x168] sm:$0xff]  }
 0x104   :  { %1935 = vmatprep.subr.bf16.mxu1 %v2273_v0 }
 0x105   :  { %1916 = vmatpush3.bf16.msra.mxu0 %v2330_v3 }
 0x106   :  { %1917 = vmatprep.subr.bf16.mxu0 %v2273_v0 }
 0x107   :  { %1936 = vmatpush3.bf16.msra.mxu1 %v2219_v47  ;;  %v2247_v47 = vld [vmem:[%s2864_s3 + $0x170] sm:$0xff]  }
 0x108   :  { %1937 = vmatprep.subr.bf16.mxu1 %v2273_v0 }
 0x109   :  { %1918 = vmatpush3.bf16.msra.mxu0 %v2339_v4 }
 0x10a   :  { %1919 = vmatprep.subr.bf16.mxu0 %v2273_v0 }
 0x10b   :  { %1938 = vmatpush3.bf16.msra.mxu1 %v2220_v48 }
 0x10c   :  { %1939 = vmatprep.subr.bf16.mxu1 %v2273_v0 }
 0x10d   :  { %1920 = vmatpush3.bf16.msra.mxu0 %v2348_v5 }
 0x10e   :  { %1921 = vmatprep.subr.bf16.mxu0 %v2273_v0 }
 0x10f   :  { %1940 = vmatpush3.bf16.msra.mxu1 %v2221_v49  ;;  %v2248_v49 = vld [vmem:[%s2864_s3 + $0x178] sm:$0xff]  }
 0x110   :  { %1941 = vmatprep.subr.bf16.mxu1 %v2273_v0 }
 0x111   :  { %1922 = vmatpush3.bf16.msra.mxu0 %v2357_v6 }
 0x112   :  { %1923 = vmatprep.subr.bf16.mxu0 %v2273_v0 }
 0x113   :  { %1942 = vmatpush3.bf16.msra.mxu1 %v2222_v50 }
 0x114   :  { %1943 = vmatprep.subr.bf16.mxu1 %v2273_v0 }
 0x115   :  { %1924 = vmatpush3.bf16.msra.mxu0 %v2364_v7 }
 0x116   :  { %1925 = vmatprep.subr.bf16.mxu0 %v2273_v0 }
 0x117   :  { %1944 = vmatpush3.bf16.msra.mxu1 %v2223_v51 }
 0x118   :  { %1945 = vmatprep.subr.bf16.mxu1 %v2273_v0 }
 0x119   :  { %1926 = vmatpush3.bf16.msra.mxu0 %v2373_v8 }
 0x11a   :  { %1951 = vmatprep.subr.bf16.mxu0 %v2273_v0 }
 0x11b   :  { %1946 = vmatpush3.bf16.msra.mxu1 %v2224_v52 }
 0x11c   :  { %1928 = vmatmul.mubr.bf16.vlgmr.msra.gmra.mrb[8].mxu0 %v1493_v42  ;;  %1971 = vmatprep.subr.bf16.mxu1 %v2273_v0  ;;  %v2242_v42 = vld [vmem:[%s2864_s3 + $0x148] sm:$0xff]  }
 0x11d   :  { %1952 = vmatpush3.bf16.msra.mxu0 %v2310_v1  ;;  %1967 = vmatprep.mubr.msk.bf16.mxu0 %vm2274_vm0, %v2273_v0 }
 0x11e   :  { %1953 = vmatprep.subr.bf16.mxu0 %v2273_v0 }
 0x121   :  { %1954 = vmatpush3.bf16.msra.mxu0 %v2321_v2 }
 0x122   :  { %1955 = vmatprep.subr.bf16.mxu0 %v2273_v0 }
 0x125   :  { %1956 = vmatpush3.bf16.msra.mxu0 %v2330_v3 }
 0x126   :  { %1957 = vmatprep.subr.bf16.mxu0 %v2273_v0 }
 0x129   :  { %1958 = vmatpush3.bf16.msra.mxu0 %v2339_v4 }
 0x12a   :  { %1959 = vmatprep.subr.bf16.mxu0 %v2273_v0 }
 0x12d   :  { %1960 = vmatpush3.bf16.msra.mxu0 %v2348_v5 }
 0x12e   :  { %1961 = vmatprep.subr.bf16.mxu0 %v2273_v0 }
 0x131   :  { %1962 = vmatpush3.bf16.msra.mxu0 %v2357_v6 }
 0x132   :  { %1963 = vmatprep.subr.bf16.mxu0 %v2273_v0 }
 0x135   :  { %1964 = vmatpush3.bf16.msra.mxu0 %v2364_v7 }
 0x136   :  { %1965 = vmatprep.subr.bf16.mxu0 %v2273_v0 }
 0x139   :  { %1966 = vmatpush3.bf16.msra.mxu0 %v2373_v8 }
 0x13a   :  { %1991 = vmatprep.subr.bf16.mxu0 %v2273_v0 }
 0x13c   :  { %1968 = vmatmul.mubr.bf16.vlgmr.msra.gmra.mrb[12].mxu0 %v1518_v43  ;;  %v2243_v43 = vld [vmem:[%s2864_s3 + $0x150] sm:$0xff]  }
 0x13d   :  { %1992 = vmatpush3.bf16.msra.mxu0 %v2310_v1  ;;  %2007 = vmatprep.mubr.msk.bf16.mxu0 %vm2274_vm0, %v2273_v0 }
 0x13e   :  { %1993 = vmatprep.subr.bf16.mxu0 %v2273_v0 }
 0x141   :  { %1994 = vmatpush3.bf16.msra.mxu0 %v2321_v2 }
 0x142   :  { %1995 = vmatprep.subr.bf16.mxu0 %v2273_v0 }
 0x145   :  { %1996 = vmatpush3.bf16.msra.mxu0 %v2330_v3 }
 0x146   :  { %1997 = vmatprep.subr.bf16.mxu0 %v2273_v0 }
 0x149   :  { %1998 = vmatpush3.bf16.msra.mxu0 %v2339_v4 }
 0x14a   :  { %1999 = vmatprep.subr.bf16.mxu0 %v2273_v0 }
 0x14d   :  { %2000 = vmatpush3.bf16.msra.mxu0 %v2348_v5 }
 0x14e   :  { %2001 = vmatprep.subr.bf16.mxu0 %v2273_v0 }
 0x151   :  { %2002 = vmatpush3.bf16.msra.mxu0 %v2357_v6 }
 0x152   :  { %2003 = vmatprep.subr.bf16.mxu0 %v2273_v0 }
 0x155   :  { %2004 = vmatpush3.bf16.msra.mxu0 %v2364_v7 }
 0x156   :  { %2005 = vmatprep.subr.bf16.mxu0 %v2273_v0 }
 0x159   :  { %2006 = vmatpush3.bf16.msra.mxu0 %v2373_v8 }
 0x15a   :  { %2031 = vmatprep.subr.bf16.mxu0 %v2273_v0 }
 0x15c   :  { %2008 = vmatmul.mubr.bf16.vlgmr.msra.gmra.mrb[16].mxu0 %v1543_v45  ;;  %v2245_v45 = vld [vmem:[%s2864_s3 + $0x160] sm:$0xff]  }
 0x15d   :  { %2032 = vmatpush3.bf16.msra.mxu0 %v2310_v1  ;;  %2047 = vmatprep.mubr.msk.bf16.mxu0 %vm2274_vm0, %v2273_v0 }
 0x15e   :  { %2033 = vmatprep.subr.bf16.mxu0 %v2273_v0 }
 0x161   :  { %2034 = vmatpush3.bf16.msra.mxu0 %v2321_v2 }
 0x162   :  { %2035 = vmatprep.subr.bf16.mxu0 %v2273_v0 }
 0x165   :  { %2036 = vmatpush3.bf16.msra.mxu0 %v2330_v3 }
 0x166   :  { %2037 = vmatprep.subr.bf16.mxu0 %v2273_v0 }
 0x169   :  { %2038 = vmatpush3.bf16.msra.mxu0 %v2339_v4 }
 0x16a   :  { %2039 = vmatprep.subr.bf16.mxu0 %v2273_v0 }
 0x16d   :  { %2040 = vmatpush3.bf16.msra.mxu0 %v2348_v5 }
 0x16e   :  { %2041 = vmatprep.subr.bf16.mxu0 %v2273_v0 }
 0x171   :  { %2042 = vmatpush3.bf16.msra.mxu0 %v2357_v6 }
 0x172   :  { %2043 = vmatprep.subr.bf16.mxu0 %v2273_v0 }
 0x175   :  { %2044 = vmatpush3.bf16.msra.mxu0 %v2364_v7 }
 0x176   :  { %2045 = vmatprep.subr.bf16.mxu0 %v2273_v0 }
 0x179   :  { %2046 = vmatpush3.bf16.msra.mxu0 %v2373_v8 }
 0x17a   :  { %2071 = vmatprep.subr.bf16.mxu0 %v2273_v0 }
 0x17c   :  { %2048 = vmatmul.mubr.bf16.vlgmr.msra.gmra.mrb[20].mxu0 %v1568_v53 }
 0x17d   :  { %2072 = vmatpush3.bf16.msra.mxu0 %v2310_v1  ;;  %2087 = vmatprep.mubr.msk.bf16.mxu0 %vm2274_vm0, %v2273_v0 }
 0x17e   :  { %2073 = vmatprep.subr.bf16.mxu0 %v2273_v0 }
 0x181   :  { %2074 = vmatpush3.bf16.msra.mxu0 %v2321_v2 }
 0x182   :  { %2075 = vmatprep.subr.bf16.mxu0 %v2273_v0 }
 0x185   :  { %2076 = vmatpush3.bf16.msra.mxu0 %v2330_v3 }
 0x186   :  { %2077 = vmatprep.subr.bf16.mxu0 %v2273_v0 }
 0x189   :  { %2078 = vmatpush3.bf16.msra.mxu0 %v2339_v4 }
 0x18a   :  { %2079 = vmatprep.subr.bf16.mxu0 %v2273_v0 }
 0x18d   :  { %2080 = vmatpush3.bf16.msra.mxu0 %v2348_v5 }
 0x18e   :  { %2081 = vmatprep.subr.bf16.mxu0 %v2273_v0 }
 0x191   :  { %2082 = vmatpush3.bf16.msra.mxu0 %v2357_v6 }
 0x192   :  { %2083 = vmatprep.subr.bf16.mxu0 %v2273_v0 }
 0x195   :  { %2084 = vmatpush3.bf16.msra.mxu0 %v2364_v7 }
 0x196   :  { %2085 = vmatprep.subr.bf16.mxu0 %v2273_v0 }
 0x199   :  { %2086 = vmatpush3.bf16.msra.mxu0 %v2373_v8 }
 0x19a   :  { %2111 = vmatprep.subr.bf16.mxu0 %v2273_v0 }
 0x19c   :  { %2088 = vmatmul.mubr.bf16.vlgmr.msra.gmra.mrb[24].mxu0 %v1593_v54 }
 0x19d   :  { %2112 = vmatpush3.bf16.msra.mxu0 %v2310_v1  ;;  %2127 = vmatprep.mubr.msk.bf16.mxu0 %vm2274_vm0, %v2273_v0 }
 0x19e   :  { %2113 = vmatprep.subr.bf16.mxu0 %v2273_v0 }
 0x1a1   :  { %2114 = vmatpush3.bf16.msra.mxu0 %v2321_v2 }
 0x1a2   :  { %2115 = vmatprep.subr.bf16.mxu0 %v2273_v0 }
 0x1a5   :  { %2116 = vmatpush3.bf16.msra.mxu0 %v2330_v3 }
 0x1a6   :  { %2117 = vmatprep.subr.bf16.mxu0 %v2273_v0 }
 0x1a9   :  { %2118 = vmatpush3.bf16.msra.mxu0 %v2339_v4 }
 0x1aa   :  { %2119 = vmatprep.subr.bf16.mxu0 %v2273_v0 }
 0x1ad   :  { %2120 = vmatpush3.bf16.msra.mxu0 %v2348_v5 }
 0x1ae   :  { %2121 = vmatprep.subr.bf16.mxu0 %v2273_v0 }
 0x1b1   :  { %2122 = vmatpush3.bf16.msra.mxu0 %v2357_v6 }
 0x1b2   :  { %2123 = vmatprep.subr.bf16.mxu0 %v2273_v0 }
 0x1b5   :  { %2124 = vmatpush3.bf16.msra.mxu0 %v2364_v7 }
 0x1b6   :  { %2125 = vmatprep.subr.bf16.mxu0 %v2273_v0 }
 0x1b9   :  { %2126 = vmatpush3.bf16.msra.mxu0 %v2373_v8 }
 0x1ba   :  { %2151 = vmatprep.subr.bf16.mxu0 %v2273_v0 }
 0x1bc   :  { %2128 = vmatmul.mubr.bf16.vlgmr.msra.gmra.mrb[28].mxu0 %v1618_v55  ;;  %v2249_v55 = vld [vmem:[%s2864_s3 + $0x180] sm:$0xff]  }
 0x1bd   :  { %2152 = vmatpush3.bf16.msra.mxu0 %v2310_v1  ;;  %2167 = vmatprep.mubr.msk.bf16.mxu0 %vm2274_vm0, %v2273_v0 }
 0x1be   :  { %2153 = vmatprep.subr.bf16.mxu0 %v2273_v0 }
 0x1c1   :  { %2154 = vmatpush3.bf16.msra.mxu0 %v2321_v2  ;;  %v1643_v2 = vld [vmem:[%s2865_s0 + $0x20] sm:$0xf] }
 0x1c2   :  { %2155 = vmatprep.subr.bf16.mxu0 %v2273_v0 }
 0x1c5   :  { %2156 = vmatpush3.bf16.msra.mxu0 %v2330_v3 }
 0x1c6   :  { %2157 = vmatprep.subr.bf16.mxu0 %v2273_v0 }
 0x1c9   :  { %2158 = vmatpush3.bf16.msra.mxu0 %v2339_v4 }
 0x1ca   :  { %2159 = vmatprep.subr.bf16.mxu0 %v2273_v0 }
 0x1cd   :  { %2160 = vmatpush3.bf16.msra.mxu0 %v2348_v5 }
 0x1ce   :  { %2161 = vmatprep.subr.bf16.mxu0 %v2273_v0 }
 0x1cf   :  { %v294_v56 = vpop.f32.mrb[4].mxu0  ;;  %v382_v57 = vpop.f32.mrb[4].mxu1 }
 0x1d0   :  { %v2636_v58 = vadd.f32 %v382_v57, %v294_v56  ;;  %v1889_v59 = vpop.f32.mrb[5].mxu0  ;;  %v1909_v60 = vpop.f32.mrb[5].mxu1  ;;  %v2250_v57 = vld [vmem:[%s2864_s3 + $0x188] sm:$0xff]  }
 0x1d1   :  { %2162 = vmatpush3.bf16.msra.mxu0 %v2357_v6  ;;  %v297_v61 = vpop.f32.mrb[6].mxu0  ;;  %v385_v62 = vpop.f32.mrb[6].mxu1  ;;  %v2251_v59 = vld [vmem:[%s2864_s3 + $0x190] sm:$0xff]   ;;  %v2252_v60 = vld [vmem:[%s2864_s3 + $0x198] sm:$0xff]  }
 0x1d2   :  { %v1890_v63 = vpop.f32.mrb[7].mxu0  ;;  %2163 = vmatprep.subr.bf16.mxu0 %v2273_v0  ;;  %v1910_v1 = vpop.f32.mrb[7].mxu1  ;;  %v2253_v61 = vld [vmem:[%s2864_s3 + $0x1a0] sm:$0xff]   ;;  %v2254_v62 = vld [vmem:[%s2864_s3 + $0x1a8] sm:$0xff]  }
 0x1d3   :  { %v2255_v63 = vld [vmem:[%s2864_s3 + $0x1b0] sm:$0xff]  }
 0x1d5   :  { %2164 = vmatpush3.bf16.msra.mxu0 %v2364_v7  ;;  %v2225_v7 = vld [vmem:[%s2864_s3 + $0xc0] sm:$0xff]  }
 0x1d6   :  { %2165 = vmatprep.subr.bf16.mxu0 %v2273_v0 }
 0x1d9   :  { %2166 = vmatpush3.bf16.msra.mxu0 %v2373_v8  ;;  %v2226_v8 = vld [vmem:[%s2864_s3 + $0xc8] sm:$0xff]  }
 0x1dc   :  { %2168 = vmatmul.mubr.bf16.vlgmr.msra.gmra.mrb[32].mxu0 %v1643_v2  ;;  %v2256_v2 = vld [vmem:[%s2864_s3 + $0x1b8] sm:$0xff]  }
 0x1ef   :  { %v424_v3 = vpop.f32.mrb[8].mxu0 }
 0x1f0   :  { %v425_v4 = vadd.f32 %v2460_v27, %v424_v3  ;;  %v1929_v5 = vpop.f32.mrb[9].mxu0 }
 0x1f1   :  { %v427_v6 = vpop.f32.mrb[10].mxu0 }
 0x1f2   :  { %v430_v9 = vmax.f32 %v425_v4, 0.0  ;;  %v1930_v10 = vpop.f32.mrb[11].mxu0 }
 0x1f3   :  { %v2257_v10 = vld [vmem:[%s2864_s3 + $0x1c0] sm:$0xff]  }
 0x1f4   :  { %v431_v11 = vpack.c.bf16 %v430_v9, %v430_v9 }
 0x1f6   :  { %1948 = vmatmul.mubr.bf16.vlgmr.msra.gmra.mrb[8].mxu1 %v431_v11  ;;  %v2258_v11 = vld [vmem:[%s2864_s3 + $0x1c8] sm:$0xff]  }
 0x1f7   :  { %1972 = vmatpush3.bf16.msra.mxu1 %v2225_v7  ;;  %1987 = vmatprep.mubr.msk.bf16.mxu1 %vm2274_vm0, %v2273_v0 }
 0x1f8   :  { %1973 = vmatprep.subr.bf16.mxu1 %v2273_v0 }
 0x1fb   :  { %1974 = vmatpush3.bf16.msra.mxu1 %v2226_v8  ;;  %v2259_v8 = vld [vmem:[%s2864_s3 + $0x1d0] sm:$0xff]  }
 0x1fc   :  { %1975 = vmatprep.subr.bf16.mxu1 %v2273_v0 }
 0x1ff   :  { %1976 = vmatpush3.bf16.msra.mxu1 %v2227_v12  ;;  %v2260_v12 = vld [vmem:[%s2864_s3 + $0x1d8] sm:$0xff]  }
 0x200   :  { %1977 = vmatprep.subr.bf16.mxu1 %v2273_v0 }
 0x203   :  { %1978 = vmatpush3.bf16.msra.mxu1 %v2228_v13  ;;  %v2261_v13 = vld [vmem:[%s2864_s3 + $0x1e0] sm:$0xff]  }
 0x204   :  { %1979 = vmatprep.subr.bf16.mxu1 %v2273_v0 }
 0x207   :  { %1980 = vmatpush3.bf16.msra.mxu1 %v2229_v14  ;;  %v2262_v14 = vld [vmem:[%s2864_s3 + $0x1e8] sm:$0xff]  }
 0x208   :  { %1981 = vmatprep.subr.bf16.mxu1 %v2273_v0 }
 0x20b   :  { %1982 = vmatpush3.bf16.msra.mxu1 %v2230_v15  ;;  %v2263_v15 = vld [vmem:[%s2864_s3 + $0x1f0] sm:$0xff]  }
 0x20c   :  { %1983 = vmatprep.subr.bf16.mxu1 %v2273_v0 }
 0x20f   :  { %v574_v17 = vpop.f32.mrb[12].mxu0  ;;  %1984 = vmatpush3.bf16.msra.mxu1 %v2231_v16 }
 0x210   :  { %v575_v19 = vadd.f32 %v2460_v27, %v574_v17  ;;  %v1969_v20 = vpop.f32.mrb[13].mxu0  ;;  %1985 = vmatprep.subr.bf16.mxu1 %v2273_v0  ;;  %v2264_v17 = vld [vmem:[%s2864_s3 + $0x1f8] sm:$0xff]  }
 0x211   :  { %v577_v21 = vpop.f32.mrb[14].mxu0 }
 0x212   :  { %v580_v22 = vmax.f32 %v575_v19, 0.0  ;;  %v1970_v23 = vpop.f32.mrb[15].mxu0 }
 0x213   :  { %1986 = vmatpush3.bf16.msra.mxu1 %v2232_v18  ;;  %v2265_v23 = vld [vmem:[%s2864_s3 + $0x200] sm:$0xff]  }
 0x214   :  { %v581_v25 = vpack.c.bf16 %v580_v22, %v580_v22  ;;  %2011 = vmatprep.subr.bf16.mxu1 %v2273_v0 }
 0x216   :  { %1988 = vmatmul.mubr.bf16.vlgmr.msra.gmra.mrb[12].mxu1 %v581_v25  ;;  %v2266_v25 = vld [vmem:[%s2864_s3 + $0x208] sm:$0xff]  }
 0x217   :  { %2012 = vmatpush3.bf16.msra.mxu1 %v2233_v24  ;;  %2027 = vmatprep.mubr.msk.bf16.mxu1 %vm2274_vm0, %v2273_v0 }
 0x218   :  { %2013 = vmatprep.subr.bf16.mxu1 %v2273_v0 }
 0x21b   :  { %2014 = vmatpush3.bf16.msra.mxu1 %v2234_v26  ;;  %v2267_v26 = vld [vmem:[%s2864_s3 + $0x210] sm:$0xff]  }
 0x21c   :  { %2015 = vmatprep.subr.bf16.mxu1 %v2273_v0 }
 0x21f   :  { %2016 = vmatpush3.bf16.msra.mxu1 %v2235_v28  ;;  %v2268_v28 = vld [vmem:[%s2864_s3 + $0x218] sm:$0xff]  }
 0x220   :  { %2017 = vmatprep.subr.bf16.mxu1 %v2273_v0 }
 0x223   :  { %2018 = vmatpush3.bf16.msra.mxu1 %v2236_v29  ;;  %v2269_v29 = vld [vmem:[%s2864_s3 + $0x220] sm:$0xff]  }
 0x224   :  { %2019 = vmatprep.subr.bf16.mxu1 %v2273_v0 }
 0x227   :  { %2020 = vmatpush3.bf16.msra.mxu1 %v2237_v30  ;;  %v2270_v30 = vld [vmem:[%s2864_s3 + $0x228] sm:$0xff]  }
 0x228   :  { %2021 = vmatprep.subr.bf16.mxu1 %v2273_v0 }
 0x22b   :  { %2022 = vmatpush3.bf16.msra.mxu1 %v2238_v31  ;;  %v2271_v31 = vld [vmem:[%s2864_s3 + $0x230] sm:$0xff]  }
 0x22c   :  { %2023 = vmatprep.subr.bf16.mxu1 %v2273_v0 }
 0x22f   :  { %v724_v33 = vpop.f32.mrb[16].mxu0  ;;  %2024 = vmatpush3.bf16.msra.mxu1 %v2239_v32 }
 0x230   :  { %v725_v35 = vadd.f32 %v2460_v27, %v724_v33  ;;  %v2009_v36 = vpop.f32.mrb[17].mxu0  ;;  %2025 = vmatprep.subr.bf16.mxu1 %v2273_v0  ;;  %v2272_v33 = vld [vmem:[%s2864_s3 + $0x238] sm:$0xff]  }
 0x231   :  { %v727_v37 = vpop.f32.mrb[18].mxu0 }
 0x232   :  { %v730_v38 = vmax.f32 %v725_v35, 0.0  ;;  %v2010_v39 = vpop.f32.mrb[19].mxu0 }
 0x233   :  { %2026 = vmatpush3.bf16.msra.mxu1 %v2240_v34 }
 0x234   :  { %v731_v41 = vpack.c.bf16 %v730_v38, %v730_v38  ;;  %2051 = vmatprep.subr.bf16.mxu1 %v2273_v0 }
 0x236   :  { %2028 = vmatmul.mubr.bf16.vlgmr.msra.gmra.mrb[16].mxu1 %v731_v41 }
 0x237   :  { %2052 = vmatpush3.bf16.msra.mxu1 %v2241_v40  ;;  %2067 = vmatprep.mubr.msk.bf16.mxu1 %vm2274_vm0, %v2273_v0 }
 0x238   :  { %2053 = vmatprep.subr.bf16.mxu1 %v2273_v0 }
 0x23b   :  { %2054 = vmatpush3.bf16.msra.mxu1 %v2242_v42 }
 0x23c   :  { %2055 = vmatprep.subr.bf16.mxu1 %v2273_v0 }
 0x23f   :  { %2056 = vmatpush3.bf16.msra.mxu1 %v2243_v43 }
 0x240   :  { %2057 = vmatprep.subr.bf16.mxu1 %v2273_v0 }
 0x243   :  { %2058 = vmatpush3.bf16.msra.mxu1 %v2244_v44 }
 0x244   :  { %2059 = vmatprep.subr.bf16.mxu1 %v2273_v0 }
 0x247   :  { %2060 = vmatpush3.bf16.msra.mxu1 %v2245_v45 }
 0x248   :  { %2061 = vmatprep.subr.bf16.mxu1 %v2273_v0 }
 0x24b   :  { %2062 = vmatpush3.bf16.msra.mxu1 %v2246_v46 }
 0x24c   :  { %2063 = vmatprep.subr.bf16.mxu1 %v2273_v0 }
 0x24f   :  { %v874_v48 = vpop.f32.mrb[20].mxu0  ;;  %2064 = vmatpush3.bf16.msra.mxu1 %v2247_v47 }
 0x250   :  { %v875_v50 = vadd.f32 %v2460_v27, %v874_v48  ;;  %v2049_v51 = vpop.f32.mrb[21].mxu0  ;;  %2065 = vmatprep.subr.bf16.mxu1 %v2273_v0 }
 0x251   :  { %v877_v52 = vpop.f32.mrb[22].mxu0 }
 0x252   :  { %v880_v53 = vmax.f32 %v875_v50, 0.0  ;;  %v2050_v54 = vpop.f32.mrb[23].mxu0 }
 0x253   :  { %2066 = vmatpush3.bf16.msra.mxu1 %v2248_v49 }
 0x254   :  { %v881_v56 = vpack.c.bf16 %v880_v53, %v880_v53  ;;  %2091 = vmatprep.subr.bf16.mxu1 %v2273_v0 }
 0x256   :  { %2068 = vmatmul.mubr.bf16.vlgmr.msra.gmra.mrb[20].mxu1 %v881_v56 }
 0x257   :  { %2092 = vmatpush3.bf16.msra.mxu1 %v2249_v55  ;;  %2107 = vmatprep.mubr.msk.bf16.mxu1 %vm2274_vm0, %v2273_v0 }
 0x258   :  { %2093 = vmatprep.subr.bf16.mxu1 %v2273_v0 }
 0x25b   :  { %2094 = vmatpush3.bf16.msra.mxu1 %v2250_v57 }
 0x25c   :  { %2095 = vmatprep.subr.bf16.mxu1 %v2273_v0 }
 0x25f   :  { %2096 = vmatpush3.bf16.msra.mxu1 %v2251_v59 }
 0x260   :  { %2097 = vmatprep.subr.bf16.mxu1 %v2273_v0 }
 0x263   :  { %2098 = vmatpush3.bf16.msra.mxu1 %v2252_v60 }
 0x264   :  { %2099 = vmatprep.subr.bf16.mxu1 %v2273_v0 }
 0x267   :  { %2100 = vmatpush3.bf16.msra.mxu1 %v2253_v61 }
 0x268   :  { %2101 = vmatprep.subr.bf16.mxu1 %v2273_v0 }
 0x26b   :  { %2102 = vmatpush3.bf16.msra.mxu1 %v2254_v62 }
 0x26c   :  { %2103 = vmatprep.subr.bf16.mxu1 %v2273_v0 }
 0x26f   :  { %v1024_v1 = vpop.f32.mrb[24].mxu0  ;;  %2104 = vmatpush3.bf16.msra.mxu1 %v2255_v63 }
 0x270   :  { %v1025_v3 = vadd.f32 %v2460_v27, %v1024_v1  ;;  %v2089_v4 = vpop.f32.mrb[25].mxu0  ;;  %2105 = vmatprep.subr.bf16.mxu1 %v2273_v0 }
 0x271   :  { %v1027_v5 = vpop.f32.mrb[26].mxu0 }
 0x272   :  { %v1030_v6 = vmax.f32 %v1025_v3, 0.0  ;;  %v2090_v9 = vpop.f32.mrb[27].mxu0 }
 0x273   :  { %2106 = vmatpush3.bf16.msra.mxu1 %v2256_v2 }
 0x274   :  { %v1031_v7 = vpack.c.bf16 %v1030_v6, %v1030_v6  ;;  %2131 = vmatprep.subr.bf16.mxu1 %v2273_v0  ;;  %v1668_v6 = vld [vmem:[%s2867_s4] ss:$0 sm:$0xff] }
 0x276   :  { %2108 = vmatmul.mubr.bf16.vlgmr.msra.gmra.mrb[24].mxu1 %v1031_v7 }
 0x277   :  { %2132 = vmatpush3.bf16.msra.mxu1 %v2257_v10  ;;  %2147 = vmatprep.mubr.msk.bf16.mxu1 %vm2274_vm0, %v2273_v0 }
 0x278   :  { %2133 = vmatprep.subr.bf16.mxu1 %v2273_v0 }
 0x27b   :  { %2134 = vmatpush3.bf16.msra.mxu1 %v2258_v11 }
 0x27c   :  { %2135 = vmatprep.subr.bf16.mxu1 %v2273_v0 }
 0x27f   :  { %2136 = vmatpush3.bf16.msra.mxu1 %v2259_v8 }
 0x280   :  { %2137 = vmatprep.subr.bf16.mxu1 %v2273_v0 }
 0x283   :  { %2138 = vmatpush3.bf16.msra.mxu1 %v2260_v12 }
 0x284   :  { %2139 = vmatprep.subr.bf16.mxu1 %v2273_v0 }
 0x287   :  { %2140 = vmatpush3.bf16.msra.mxu1 %v2261_v13 }
 0x288   :  { %2141 = vmatprep.subr.bf16.mxu1 %v2273_v0 }
 0x28b   :  { %2142 = vmatpush3.bf16.msra.mxu1 %v2262_v14 }
 0x28c   :  { %2143 = vmatprep.subr.bf16.mxu1 %v2273_v0 }
 0x28f   :  { %v1174_v16 = vpop.f32.mrb[28].mxu0  ;;  %2144 = vmatpush3.bf16.msra.mxu1 %v2263_v15 }
 0x290   :  { %v1175_v18 = vadd.f32 %v2460_v27, %v1174_v16  ;;  %v2129_v19 = vpop.f32.mrb[29].mxu0  ;;  %2145 = vmatprep.subr.bf16.mxu1 %v2273_v0 }
 0x291   :  { %v1177_v20 = vpop.f32.mrb[30].mxu0 }
 0x292   :  { %v1180_v21 = vmax.f32 %v1175_v18, 0.0  ;;  %v2130_v22 = vpop.f32.mrb[31].mxu0 }
 0x293   :  { %2146 = vmatpush3.bf16.msra.mxu1 %v2264_v17 }
 0x294   :  { %v1181_v24 = vpack.c.bf16 %v1180_v21, %v1180_v21  ;;  %2171 = vmatprep.subr.bf16.mxu1 %v2273_v0 }
 0x296   :  { %2148 = vmatmul.mubr.bf16.vlgmr.msra.gmra.mrb[28].mxu1 %v1181_v24 }
 0x297   :  { %2172 = vmatpush3.bf16.msra.mxu1 %v2265_v23  ;;  %2187 = vmatprep.mubr.msk.bf16.mxu1 %vm2274_vm0, %v2273_v0 }
 0x298   :  { %2173 = vmatprep.subr.bf16.mxu1 %v2273_v0 }
 0x29b   :  { %2174 = vmatpush3.bf16.msra.mxu1 %v2266_v25 }
 0x29c   :  { %2175 = vmatprep.subr.bf16.mxu1 %v2273_v0 }
 0x29f   :  { %2176 = vmatpush3.bf16.msra.mxu1 %v2267_v26 }
 0x2a0   :  { %2177 = vmatprep.subr.bf16.mxu1 %v2273_v0 }
 0x2a3   :  { %2178 = vmatpush3.bf16.msra.mxu1 %v2268_v28 }
 0x2a4   :  { %2179 = vmatprep.subr.bf16.mxu1 %v2273_v0 }
 0x2a7   :  { %2180 = vmatpush3.bf16.msra.mxu1 %v2269_v29 }
 0x2a8   :  { %2181 = vmatprep.subr.bf16.mxu1 %v2273_v0 }
 0x2ab   :  { %2182 = vmatpush3.bf16.msra.mxu1 %v2270_v30 }
 0x2ac   :  { %2183 = vmatprep.subr.bf16.mxu1 %v2273_v0 }
 0x2af   :  { %v1324_v32 = vpop.f32.mrb[32].mxu0  ;;  %2184 = vmatpush3.bf16.msra.mxu1 %v2271_v31 }
 0x2b0   :  { %v1325_v34 = vadd.f32 %v2460_v27, %v1324_v32  ;;  %v2169_v35 = vpop.f32.mrb[33].mxu0  ;;  %2185 = vmatprep.subr.bf16.mxu1 %v2273_v0 }
 0x2b1   :  { %v1327_v36 = vpop.f32.mrb[34].mxu0 }
 0x2b2   :  { %v1330_v37 = vmax.f32 %v1325_v34, 0.0  ;;  %v2170_v38 = vpop.f32.mrb[35].mxu0 }
 0x2b3   :  { %2186 = vmatpush3.bf16.msra.mxu1 %v2272_v33 }
 0x2b4   :  { %v1331_v39 = vpack.c.bf16 %v1330_v37, %v1330_v37 }
 0x2b6   :  { %2188 = vmatmul.mubr.bf16.vlgmr.msra.gmra.mrb[32].mxu1 %v1331_v39 }
 0x2c9   :  { %v531_v40 = vpop.f32.mrb[8].mxu1 }
 0x2ca   :  { %v537_v41 = vadd.f32 %v531_v40, %v2636_v58  ;;  %v1949_v42 = vpop.f32.mrb[9].mxu1 }
 0x2cb   :  { %v534_v43 = vpop.f32.mrb[10].mxu1 }
 0x2cc   :  { %v1950_v44 = vpop.f32.mrb[11].mxu1 }
 0x2e9   :  { %v681_v45 = vpop.f32.mrb[12].mxu1 }
 0x2ea   :  { %v687_v46 = vadd.f32 %v681_v45, %v537_v41  ;;  %v1989_v47 = vpop.f32.mrb[13].mxu1 }
 0x2eb   :  { %v684_v48 = vpop.f32.mrb[14].mxu1 }
 0x2ec   :  { %v1990_v27 = vpop.f32.mrb[15].mxu1 }
 0x309   :  { %v831_v49 = vpop.f32.mrb[16].mxu1 }
 0x30a   :  { %v837_v50 = vadd.f32 %v831_v49, %v687_v46  ;;  %v2029_v0 = vpop.f32.mrb[17].mxu1 }
 0x30b   :  { %v834_v51 = vpop.f32.mrb[18].mxu1 }
 0x30c   :  { %v2030_v52 = vpop.f32.mrb[19].mxu1 }
 0x329   :  { %v981_v53 = vpop.f32.mrb[20].mxu1 }
 0x32a   :  { %v987_v54 = vadd.f32 %v981_v53, %v837_v50  ;;  %v2069_v55 = vpop.f32.mrb[21].mxu1 }
 0x32b   :  { %v984_v56 = vpop.f32.mrb[22].mxu1 }
 0x32c   :  { %v2070_v57 = vpop.f32.mrb[23].mxu1 }
 0x349   :  { %v1131_v59 = vpop.f32.mrb[24].mxu1 }
 0x34a   :  { %v1137_v58 = vadd.f32 %v1131_v59, %v987_v54  ;;  %v2109_v60 = vpop.f32.mrb[25].mxu1 }
 0x34b   :  { %v1134_v61 = vpop.f32.mrb[26].mxu1 }
 0x34c   :  { %v2110_v62 = vpop.f32.mrb[27].mxu1 }
 0x369   :  { %v1281_v63 = vpop.f32.mrb[28].mxu1 }
 0x36a   :  { %v1287_v1 = vadd.f32 %v1281_v63, %v1137_v58  ;;  %v2149_v2 = vpop.f32.mrb[29].mxu1 }
 0x36b   :  { %v1284_v3 = vpop.f32.mrb[30].mxu1 }
 0x36c   :  { %v2150_v4 = vpop.f32.mrb[31].mxu1 }
 0x389   :  { %v1431_v5 = vpop.f32.mrb[32].mxu1 }
 0x38a   :  { %v1437_v9 = vadd.f32 %v1431_v5, %v1287_v1  ;;  %v2189_v10 = vpop.f32.mrb[33].mxu1 }
 0x38b   :  { %v1434_v7 = vpop.f32.mrb[34].mxu1 }
 0x38c   :  { %v1445_v11 = vadd.f32 %v1668_v6, %v1437_v9  ;;  %v2190_v8 = vpop.f32.mrb[35].mxu1 }
 0x38e   :  { %1446 = vst [vmem:[%s2868_s5] sm:$0xff] %v1445_v11 }

</bundles_post_ra>
